<compile_context>
chip_gen: v6e
topology: v6e:2x2x1
jax: 0.10.0
libtpu: 0.0.40
codegen_flags: <defaults>
</compile_context>

<pallas_src>
import jax
import jax.numpy as jnp
from jax.experimental import pallas as pl
from jax.experimental.pallas import tpu as pltpu

# ---- model hyperparameters (small, deterministic) ----
BATCH = 2
N_NODES = 8
STATE_DIM = 32
ANNOTATION_DIM = 16     # unused on the annotations=None path
N_EDGE_TYPES = 2
N_STEPS = 3


def ggnn_kernel(x_ref, a_ref, p_ref, out_ref):
    """Entire GGNN forward (all steps, all batch elements) in one invocation."""
    D = STATE_DIM
    E = N_EDGE_TYPES

    x = x_ref[...]                          # (B*N, D)
    a_blk = a_ref[...]                      # (B*N, E*B*N)  block-diag over batch, edge-major cols

    # Single packed parameter slab; hoist all slices / bias rows out of the step loop.
    #   rows [0, D)      : w_edge (D, 2*E*D)   [W_in0|W_out0|W_in1|W_out1]
    #   rows [D, 4D)     : w_gru  (3D, 3D)     [W_r|W_z|W_t]        (lane-padded)
    #   rows [4D, 5D)    : w_gcn  (D, D)                            (lane-padded)
    #   row  5D          : b_edge (1, 2*E*D)   [b_in0|b_out0|b_in1|b_out1]
    #   row  5D+1        : [b_r|b_z|b_t|b_gcn] (1, 4D)
    w_edge = p_ref[0:D, :]                  # (D, 2*E*D)
    w_gru = p_ref[D:4 * D, 0:3 * D]         # (3D, 3D)
    w_gcn = p_ref[4 * D:5 * D, 0:D]         # (D, D)
    bias = p_ref[5 * D:5 * D + 2, :]        # (2, 2*E*D)

    w_rz = w_gru[:, :2 * D]                 # (3D, 2D)   [W_r | W_z]
    w_t = w_gru[:, 2 * D:3 * D]             # (3D, D)
    b_edge = bias[0:1, :2 * E * D]          # (1, 2*E*D)
    b_rz = bias[1:2, 0:2 * D]               # (1, 2D)    [b_r | b_z]
    b_t = bias[1:2, 2 * D:3 * D]            # (1, D)
    b_gcn = bias[1:2, 3 * D:4 * D]          # (1, D)

    for _step in range(N_STEPS):
        # All edge-type in/out linears in a single lane-dense MXU push.
        msgs = jnp.dot(x, w_edge, preferred_element_type=jnp.float32) + b_edge     # (B*N, 2*E*D)
        # Stack edge types along rows (edge-major) to match a_blk's column layout.
        m_stack = jnp.concatenate(
            [msgs[:, e * 2 * D:(e + 1) * 2 * D] for e in range(E)], axis=0)        # (E*B*N, 2D)
        # Adjacency contraction over (edge type, batch, source node) in one push.
        # Result columns are [a_in | a_out].
        aio = jnp.dot(a_blk, m_stack, preferred_element_type=jnp.float32)          # (B*N, 2D)

        ax = jnp.concatenate([aio, x], axis=-1)                                     # (B*N, 3D)
        rz = jax.nn.sigmoid(
            jnp.dot(ax, w_rz, preferred_element_type=jnp.float32) + b_rz)           # (B*N, 2D)
        r = rz[:, :D]
        z = rz[:, D:2 * D]
        axr = jnp.concatenate([aio, r * x], axis=-1)                                 # (B*N, 3D)
        h_hat = jnp.tanh(
            jnp.dot(axr, w_t, preferred_element_type=jnp.float32) + b_t)             # (B*N, D)
        x = (1.0 - z) * x + z * h_hat

    out_ref[...] = jnp.dot(x, w_gcn, preferred_element_type=jnp.float32) + b_gcn


def _block_adjacency(A, batch, n_nodes):
    """PyTorch layout A[b, n, m*E + e] -> block-diagonal slab of shape (B*N, E*B*N)
    with A_blk[b*N+n, e*B*N + b'*N + m] = A[b, n, m*E+e] * (b == b')."""
    E = N_EDGE_TYPES
    a_split = A.reshape(batch, n_nodes, n_nodes, E).transpose(0, 3, 1, 2)  # (B, E, N, N)
    eye_b = jnp.eye(batch, dtype=A.dtype)
    # bd[e, b, n, b', m] = a_split[b, e, n, m] * (b == b')
    bd = jnp.einsum('benm,bc->ebncm', a_split, eye_b)
    return bd.transpose(1, 2, 0, 3, 4).reshape(batch * n_nodes, E * batch * n_nodes)


def _pack_params(params):
    """Pack the 12 small parameter tensors into ONE lane-dense (5D+2, 2*E*D) slab."""
    (w_in, b_in, w_out, b_out, w_r, b_r, w_z, b_z, w_t, b_t, w_gcn, b_gcn) = params
    D, E = STATE_DIM, N_EDGE_TYPES
    W = 2 * E * D  # 128 lanes

    w_edge = jnp.concatenate(
        [jnp.concatenate([w_in[e], w_out[e]], axis=1) for e in range(E)], axis=1)   # (D, 2*E*D)
    b_edge = jnp.concatenate(
        [jnp.concatenate([b_in[e], b_out[e]], axis=1) for e in range(E)], axis=1)   # (1, 2*E*D)
    w_gru = jnp.concatenate([w_r, w_z, w_t], axis=1)                                # (3D, 3D)
    b_misc = jnp.concatenate([b_r, b_z, b_t, b_gcn], axis=1)                        # (1, 4D)

    def pad_lanes(v):
        return jnp.pad(v, ((0, 0), (0, W - v.shape[1])))

    slab = jnp.concatenate(
        [pad_lanes(w_edge),     # rows [0, D)
         pad_lanes(w_gru),      # rows [D, 4D)
         pad_lanes(w_gcn),      # rows [4D, 5D)
         pad_lanes(b_edge),     # row  5D
         pad_lanes(b_misc)],    # row  5D + 1
        axis=0)                 # (5D+2, 2*E*D) f32
    return slab


@jax.jit
def ggnn_forward(prop_state, A, params):
    """prop_state: (batch, n_nodes, state_dim) f32
       A:          (batch, n_nodes, n_nodes * n_edge_types) f32 (PyTorch layout)
    """
    batch, n_nodes, D = prop_state.shape
    BN = batch * n_nodes

    x2d = prop_state.reshape(BN, D)
    a_blk = _block_adjacency(A, batch, n_nodes)
    slab = _pack_params(params)

    def full_spec(shape):
        nd = len(shape)
        return pl.BlockSpec(shape, lambda i, _nd=nd: (0,) * _nd)

    out = pl.pallas_call(
        ggnn_kernel,
        out_shape=jax.ShapeDtypeStruct((BN, D), jnp.float32),
        grid=(1,),
        in_specs=[full_spec(x2d.shape), full_spec(a_blk.shape), full_spec(slab.shape)],
        out_specs=full_spec((BN, D)),
        compiler_params=pltpu.CompilerParams(
            dimension_semantics=("arbitrary",)),
    )(x2d, a_blk, slab)
    return out.reshape(batch, n_nodes, D)


def init_params(key):
    """Deterministic init matching GGNN._initialization:
    weights ~ N(0, 0.02), biases = 0. Weights stored as (in, out)."""
    D, E = STATE_DIM, N_EDGE_TYPES
    ks = jax.random.split(key, 8)
    std = 0.02
    w_in = std * jax.random.normal(ks[0], (E, D, D), jnp.float32)
    b_in = jnp.zeros((E, 1, D), jnp.float32)
    w_out = std * jax.random.normal(ks[1], (E, D, D), jnp.float32)
    b_out = jnp.zeros((E, 1, D), jnp.float32)
    w_r = std * jax.random.normal(ks[2], (3 * D, D), jnp.float32)
    b_r = jnp.zeros((1, D), jnp.float32)
    w_z = std * jax.random.normal(ks[3], (3 * D, D), jnp.float32)
    b_z = jnp.zeros((1, D), jnp.float32)
    w_t = std * jax.random.normal(ks[4], (3 * D, D), jnp.float32)
    b_t = jnp.zeros((1, D), jnp.float32)
    w_gcn = std * jax.random.normal(ks[5], (D, D), jnp.float32)
    b_gcn = jnp.zeros((1, D), jnp.float32)
    return (w_in, b_in, w_out, b_out, w_r, b_r, w_z, b_z, w_t, b_t, w_gcn, b_gcn)


def ggnn_reference(prop_state, A, params):
    """Pure-JAX reference mirroring the PyTorch forward (annotations=None)."""
    (w_in, b_in, w_out, b_out, w_r, b_r, w_z, b_z, w_t, b_t, w_gcn, b_gcn) = params
    batch, n_nodes, D = prop_state.shape
    E = N_EDGE_TYPES
    A_split = A.reshape(batch, n_nodes, n_nodes, E).transpose(0, 3, 1, 2)
    x = prop_state
    for _ in range(N_STEPS):
        a_in = jnp.zeros_like(x)
        a_out = jnp.zeros_like(x)
        for e in range(E):
            in_e = x @ w_in[e] + b_in[e]
            out_e = x @ w_out[e] + b_out[e]
            a_in = a_in + jnp.einsum('bnm,bmd->bnd', A_split[:, e], in_e)
            a_out = a_out + jnp.einsum('bnm,bmd->bnd', A_split[:, e], out_e)
        a = jnp.concatenate([a_in, a_out, x], axis=-1)
        r = jax.nn.sigmoid(a @ w_r + b_r)
        z = jax.nn.sigmoid(a @ w_z + b_z)
        joined = jnp.concatenate([a_in, a_out, r * x], axis=-1)
        h_hat = jnp.tanh(joined @ w_t + b_t)
        x = (1.0 - z) * x + z * h_hat
    return x @ w_gcn + b_gcn


if __name__ == "__main__":
    key = jax.random.PRNGKey(0)
    k_param, k_state, k_adj = jax.random.split(key, 3)

    params = init_params(k_param)
    prop_state = jax.random.normal(
        k_state, (BATCH, N_NODES, STATE_DIM), jnp.float32)
    # dense non-negative adjacency, PyTorch layout (batch, n_nodes, n_nodes*E)
    A = jax.random.uniform(
        k_adj, (BATCH, N_NODES, N_NODES * N_EDGE_TYPES), jnp.float32)

    out = ggnn_forward(prop_state, A, params)
    out = jax.block_until_ready(out)

    ref = ggnn_reference(prop_state, A, params)
    assert out.shape == (BATCH, N_NODES, STATE_DIM)
    assert jnp.allclose(out, ref, atol=1e-5, rtol=1e-5), "Pallas kernel mismatch vs JAX reference"

    print("KERNEL_OK")
</pallas_src>

<mosaic_0001>
module attributes {stable_mosaic.version = 11 : i64} {
  func.func @ggnn_kernel(%arg0: i32, %arg1: memref<16x32xf32, #tpu.memory_space<vmem>>, %arg2: memref<16x32xf32, #tpu.memory_space<vmem>>, %arg3: memref<162x128xf32, #tpu.memory_space<vmem>>, %arg4: memref<16x32xf32, #tpu.memory_space<vmem>>) attributes {dimension_semantics = [#tpu.dimension_semantics<arbitrary>], iteration_bounds = array<i64: 1>, scalar_prefetch = 0 : i64, scratch_operands = 0 : i64, tpu.core_type = #tpu.core_type<tc>, window_params = [{pipeline_mode = #tpu.pipeline_mode<synchronous>, transform_indices = @transform_0, window_bounds = array<i64: 16, 32>}, {pipeline_mode = #tpu.pipeline_mode<synchronous>, transform_indices = @transform_1, window_bounds = array<i64: 16, 32>}, {pipeline_mode = #tpu.pipeline_mode<synchronous>, transform_indices = @transform_2, window_bounds = array<i64: 162, 128>}, {pipeline_mode = #tpu.pipeline_mode<synchronous>, transform_indices = @transform_3, window_bounds = array<i64: 16, 32>}]} {
    %c0 = arith.constant 0 : index
    %c0_0 = arith.constant 0 : index
    %0 = vector.load %arg1[%c0, %c0_0] : memref<16x32xf32, #tpu.memory_space<vmem>>, vector<16x32xf32>
    %c0_1 = arith.constant 0 : index
    %c0_2 = arith.constant 0 : index
    %1 = vector.load %arg2[%c0_1, %c0_2] : memref<16x32xf32, #tpu.memory_space<vmem>>, vector<16x32xf32>
    %c0_3 = arith.constant 0 : index
    %c0_4 = arith.constant 0 : index
    %2 = vector.load %arg3[%c0_3, %c0_4] : memref<162x128xf32, #tpu.memory_space<vmem>>, vector<32x128xf32>
    %c32 = arith.constant 32 : index
    %c0_5 = arith.constant 0 : index
    %3 = vector.load %arg3[%c32, %c0_5] : memref<162x128xf32, #tpu.memory_space<vmem>>, vector<96x96xf32>
    %c128 = arith.constant 128 : index
    %c0_6 = arith.constant 0 : index
    %4 = vector.load %arg3[%c128, %c0_6] : memref<162x128xf32, #tpu.memory_space<vmem>>, vector<32x32xf32>
    %c160 = arith.constant 160 : index
    %c0_7 = arith.constant 0 : index
    %5 = vector.load %arg3[%c160, %c0_7] : memref<162x128xf32, #tpu.memory_space<vmem>>, vector<2x128xf32>
    %6 = vector.extract_strided_slice %3 {offsets = [0, 0], sizes = [96, 64], strides = [1, 1]} : vector<96x96xf32> to vector<96x64xf32>
    %7 = vector.extract_strided_slice %3 {offsets = [0, 64], sizes = [96, 32], strides = [1, 1]} : vector<96x96xf32> to vector<96x32xf32>
    %8 = vector.extract_strided_slice %5 {offsets = [0, 0], sizes = [1, 128], strides = [1, 1]} : vector<2x128xf32> to vector<1x128xf32>
    %9 = vector.extract_strided_slice %5 {offsets = [1, 0], sizes = [1, 64], strides = [1, 1]} : vector<2x128xf32> to vector<1x64xf32>
    %10 = vector.extract_strided_slice %5 {offsets = [1, 64], sizes = [1, 32], strides = [1, 1]} : vector<2x128xf32> to vector<1x32xf32>
    %11 = vector.extract_strided_slice %5 {offsets = [1, 96], sizes = [1, 32], strides = [1, 1]} : vector<2x128xf32> to vector<1x32xf32>
    %cst = arith.constant dense<0.000000e+00> : vector<16x128xf32>
    %12 = tpu.matmul %0, %2, %cst {dimension_numbers = #tpu.dot_dimension_numbers<[1], [0], [0], [1], [0, 0, 1, 1], [], []>} : vector<16x32xf32>, vector<32x128xf32>, vector<16x128xf32> -> vector<16x128xf32>
    %13 = vector.broadcast %8 : vector<1x128xf32> to vector<16x128xf32>
    %14 = arith.addf %12, %13 : vector<16x128xf32>
    %15 = vector.extract_strided_slice %14 {offsets = [0, 0], sizes = [16, 64], strides = [1, 1]} : vector<16x128xf32> to vector<16x64xf32>
    %16 = vector.extract_strided_slice %14 {offsets = [0, 64], sizes = [16, 64], strides = [1, 1]} : vector<16x128xf32> to vector<16x64xf32>
    %17 = tpu.concatenate %15, %16 in 0 : vector<16x64xf32>, vector<16x64xf32> -> vector<32x64xf32>
    %cst_8 = arith.constant dense<0.000000e+00> : vector<16x64xf32>
    %18 = tpu.matmul %1, %17, %cst_8 {dimension_numbers = #tpu.dot_dimension_numbers<[1], [0], [0], [1], [0, 0, 1, 1], [], []>} : vector<16x32xf32>, vector<32x64xf32>, vector<16x64xf32> -> vector<16x64xf32>
    %19 = tpu.concatenate %18, %0 in 1 : vector<16x64xf32>, vector<16x32xf32> -> vector<16x96xf32>
    %cst_9 = arith.constant dense<0.000000e+00> : vector<16x64xf32>
    %20 = tpu.matmul %19, %6, %cst_9 {dimension_numbers = #tpu.dot_dimension_numbers<[1], [0], [0], [1], [0, 0, 1, 1], [], []>} : vector<16x96xf32>, vector<96x64xf32>, vector<16x64xf32> -> vector<16x64xf32>
    %21 = vector.broadcast %9 : vector<1x64xf32> to vector<16x64xf32>
    %22 = arith.addf %20, %21 : vector<16x64xf32>
    %23 = arith.negf %22 : vector<16x64xf32>
    %24 = math.exp %23 : vector<16x64xf32>
    %cst_10 = arith.constant 1.000000e+00 : f32
    %25 = vector.broadcast %cst_10 : f32 to vector<16x64xf32>
    %26 = arith.addf %25, %24 : vector<16x64xf32>
    %27 = arith.divf %25, %26 : vector<16x64xf32>
    %28 = vector.extract_strided_slice %27 {offsets = [0, 0], sizes = [16, 32], strides = [1, 1]} : vector<16x64xf32> to vector<16x32xf32>
    %29 = vector.extract_strided_slice %27 {offsets = [0, 32], sizes = [16, 32], strides = [1, 1]} : vector<16x64xf32> to vector<16x32xf32>
    %30 = arith.mulf %28, %0 : vector<16x32xf32>
    %31 = tpu.concatenate %18, %30 in 1 : vector<16x64xf32>, vector<16x32xf32> -> vector<16x96xf32>
    %cst_11 = arith.constant dense<0.000000e+00> : vector<16x32xf32>
    %32 = tpu.matmul %31, %7, %cst_11 {dimension_numbers = #tpu.dot_dimension_numbers<[1], [0], [0], [1], [0, 0, 1, 1], [], []>} : vector<16x96xf32>, vector<96x32xf32>, vector<16x32xf32> -> vector<16x32xf32>
    %33 = vector.broadcast %10 : vector<1x32xf32> to vector<16x32xf32>
    %34 = arith.addf %32, %33 : vector<16x32xf32>
    %35 = math.tanh %34 : vector<16x32xf32>
    %cst_12 = arith.constant 1.000000e+00 : f32
    %36 = vector.broadcast %cst_12 : f32 to vector<16x32xf32>
    %37 = arith.subf %36, %29 : vector<16x32xf32>
    %38 = arith.mulf %37, %0 : vector<16x32xf32>
    %39 = arith.mulf %29, %35 : vector<16x32xf32>
    %40 = arith.addf %38, %39 : vector<16x32xf32>
    %cst_13 = arith.constant dense<0.000000e+00> : vector<16x128xf32>
    %41 = tpu.matmul %40, %2, %cst_13 {dimension_numbers = #tpu.dot_dimension_numbers<[1], [0], [0], [1], [0, 0, 1, 1], [], []>} : vector<16x32xf32>, vector<32x128xf32>, vector<16x128xf32> -> vector<16x128xf32>
    %42 = vector.broadcast %8 : vector<1x128xf32> to vector<16x128xf32>
    %43 = arith.addf %41, %42 : vector<16x128xf32>
    %44 = vector.extract_strided_slice %43 {offsets = [0, 0], sizes = [16, 64], strides = [1, 1]} : vector<16x128xf32> to vector<16x64xf32>
    %45 = vector.extract_strided_slice %43 {offsets = [0, 64], sizes = [16, 64], strides = [1, 1]} : vector<16x128xf32> to vector<16x64xf32>
    %46 = tpu.concatenate %44, %45 in 0 : vector<16x64xf32>, vector<16x64xf32> -> vector<32x64xf32>
    %cst_14 = arith.constant dense<0.000000e+00> : vector<16x64xf32>
    %47 = tpu.matmul %1, %46, %cst_14 {dimension_numbers = #tpu.dot_dimension_numbers<[1], [0], [0], [1], [0, 0, 1, 1], [], []>} : vector<16x32xf32>, vector<32x64xf32>, vector<16x64xf32> -> vector<16x64xf32>
    %48 = tpu.concatenate %47, %40 in 1 : vector<16x64xf32>, vector<16x32xf32> -> vector<16x96xf32>
    %cst_15 = arith.constant dense<0.000000e+00> : vector<16x64xf32>
    %49 = tpu.matmul %48, %6, %cst_15 {dimension_numbers = #tpu.dot_dimension_numbers<[1], [0], [0], [1], [0, 0, 1, 1], [], []>} : vector<16x96xf32>, vector<96x64xf32>, vector<16x64xf32> -> vector<16x64xf32>
    %50 = vector.broadcast %9 : vector<1x64xf32> to vector<16x64xf32>
    %51 = arith.addf %49, %50 : vector<16x64xf32>
    %52 = arith.negf %51 : vector<16x64xf32>
    %53 = math.exp %52 : vector<16x64xf32>
    %cst_16 = arith.constant 1.000000e+00 : f32
    %54 = vector.broadcast %cst_16 : f32 to vector<16x64xf32>
    %55 = arith.addf %54, %53 : vector<16x64xf32>
    %56 = arith.divf %54, %55 : vector<16x64xf32>
    %57 = vector.extract_strided_slice %56 {offsets = [0, 0], sizes = [16, 32], strides = [1, 1]} : vector<16x64xf32> to vector<16x32xf32>
    %58 = vector.extract_strided_slice %56 {offsets = [0, 32], sizes = [16, 32], strides = [1, 1]} : vector<16x64xf32> to vector<16x32xf32>
    %59 = arith.mulf %57, %40 : vector<16x32xf32>
    %60 = tpu.concatenate %47, %59 in 1 : vector<16x64xf32>, vector<16x32xf32> -> vector<16x96xf32>
    %cst_17 = arith.constant dense<0.000000e+00> : vector<16x32xf32>
    %61 = tpu.matmul %60, %7, %cst_17 {dimension_numbers = #tpu.dot_dimension_numbers<[1], [0], [0], [1], [0, 0, 1, 1], [], []>} : vector<16x96xf32>, vector<96x32xf32>, vector<16x32xf32> -> vector<16x32xf32>
    %62 = vector.broadcast %10 : vector<1x32xf32> to vector<16x32xf32>
    %63 = arith.addf %61, %62 : vector<16x32xf32>
    %64 = math.tanh %63 : vector<16x32xf32>
    %cst_18 = arith.constant 1.000000e+00 : f32
    %65 = vector.broadcast %cst_18 : f32 to vector<16x32xf32>
    %66 = arith.subf %65, %58 : vector<16x32xf32>
    %67 = arith.mulf %66, %40 : vector<16x32xf32>
    %68 = arith.mulf %58, %64 : vector<16x32xf32>
    %69 = arith.addf %67, %68 : vector<16x32xf32>
    %cst_19 = arith.constant dense<0.000000e+00> : vector<16x128xf32>
    %70 = tpu.matmul %69, %2, %cst_19 {dimension_numbers = #tpu.dot_dimension_numbers<[1], [0], [0], [1], [0, 0, 1, 1], [], []>} : vector<16x32xf32>, vector<32x128xf32>, vector<16x128xf32> -> vector<16x128xf32>
    %71 = vector.broadcast %8 : vector<1x128xf32> to vector<16x128xf32>
    %72 = arith.addf %70, %71 : vector<16x128xf32>
    %73 = vector.extract_strided_slice %72 {offsets = [0, 0], sizes = [16, 64], strides = [1, 1]} : vector<16x128xf32> to vector<16x64xf32>
    %74 = vector.extract_strided_slice %72 {offsets = [0, 64], sizes = [16, 64], strides = [1, 1]} : vector<16x128xf32> to vector<16x64xf32>
    %75 = tpu.concatenate %73, %74 in 0 : vector<16x64xf32>, vector<16x64xf32> -> vector<32x64xf32>
    %cst_20 = arith.constant dense<0.000000e+00> : vector<16x64xf32>
    %76 = tpu.matmul %1, %75, %cst_20 {dimension_numbers = #tpu.dot_dimension_numbers<[1], [0], [0], [1], [0, 0, 1, 1], [], []>} : vector<16x32xf32>, vector<32x64xf32>, vector<16x64xf32> -> vector<16x64xf32>
    %77 = tpu.concatenate %76, %69 in 1 : vector<16x64xf32>, vector<16x32xf32> -> vector<16x96xf32>
    %cst_21 = arith.constant dense<0.000000e+00> : vector<16x64xf32>
    %78 = tpu.matmul %77, %6, %cst_21 {dimension_numbers = #tpu.dot_dimension_numbers<[1], [0], [0], [1], [0, 0, 1, 1], [], []>} : vector<16x96xf32>, vector<96x64xf32>, vector<16x64xf32> -> vector<16x64xf32>
    %79 = vector.broadcast %9 : vector<1x64xf32> to vector<16x64xf32>
    %80 = arith.addf %78, %79 : vector<16x64xf32>
    %81 = arith.negf %80 : vector<16x64xf32>
    %82 = math.exp %81 : vector<16x64xf32>
    %cst_22 = arith.constant 1.000000e+00 : f32
    %83 = vector.broadcast %cst_22 : f32 to vector<16x64xf32>
    %84 = arith.addf %83, %82 : vector<16x64xf32>
    %85 = arith.divf %83, %84 : vector<16x64xf32>
    %86 = vector.extract_strided_slice %85 {offsets = [0, 0], sizes = [16, 32], strides = [1, 1]} : vector<16x64xf32> to vector<16x32xf32>
    %87 = vector.extract_strided_slice %85 {offsets = [0, 32], sizes = [16, 32], strides = [1, 1]} : vector<16x64xf32> to vector<16x32xf32>
    %88 = arith.mulf %86, %69 : vector<16x32xf32>
    %89 = tpu.concatenate %76, %88 in 1 : vector<16x64xf32>, vector<16x32xf32> -> vector<16x96xf32>
    %cst_23 = arith.constant dense<0.000000e+00> : vector<16x32xf32>
    %90 = tpu.matmul %89, %7, %cst_23 {dimension_numbers = #tpu.dot_dimension_numbers<[1], [0], [0], [1], [0, 0, 1, 1], [], []>} : vector<16x96xf32>, vector<96x32xf32>, vector<16x32xf32> -> vector<16x32xf32>
    %91 = vector.broadcast %10 : vector<1x32xf32> to vector<16x32xf32>
    %92 = arith.addf %90, %91 : vector<16x32xf32>
    %93 = math.tanh %92 : vector<16x32xf32>
    %cst_24 = arith.constant 1.000000e+00 : f32
    %94 = vector.broadcast %cst_24 : f32 to vector<16x32xf32>
    %95 = arith.subf %94, %87 : vector<16x32xf32>
    %96 = arith.mulf %95, %69 : vector<16x32xf32>
    %97 = arith.mulf %87, %93 : vector<16x32xf32>
    %98 = arith.addf %96, %97 : vector<16x32xf32>
    %cst_25 = arith.constant dense<0.000000e+00> : vector<16x32xf32>
    %99 = tpu.matmul %98, %4, %cst_25 {dimension_numbers = #tpu.dot_dimension_numbers<[1], [0], [0], [1], [0, 0, 1, 1], [], []>} : vector<16x32xf32>, vector<32x32xf32>, vector<16x32xf32> -> vector<16x32xf32>
    %100 = vector.broadcast %11 : vector<1x32xf32> to vector<16x32xf32>
    %101 = arith.addf %99, %100 : vector<16x32xf32>
    %c0_26 = arith.constant 0 : index
    %c0_27 = arith.constant 0 : index
    %102 = vector.load %arg4[%c0_26, %c0_27] : memref<16x32xf32, #tpu.memory_space<vmem>>, vector<16x32xf32>
    tpu.vector_store %arg4[%c0_26, %c0_27], %101 {strides = array<i32>} : memref<16x32xf32, #tpu.memory_space<vmem>>, vector<16x32xf32>,
    return
  }
  func.func @transform_0(%arg0: i32) -> (i32, i32) {
    %c0_i32 = arith.constant 0 : i32
    %c0_i32_0 = arith.constant 0 : i32
    %c0_i32_1 = arith.constant 0 : i32
    return %c0_i32, %c0_i32_0 : i32, i32
  }
  func.func @transform_1(%arg0: i32) -> (i32, i32) {
    %c0_i32 = arith.constant 0 : i32
    %c0_i32_0 = arith.constant 0 : i32
    %c0_i32_1 = arith.constant 0 : i32
    return %c0_i32, %c0_i32_0 : i32, i32
  }
  func.func @transform_2(%arg0: i32) -> (i32, i32) {
    %c0_i32 = arith.constant 0 : i32
    %c0_i32_0 = arith.constant 0 : i32
    %c0_i32_1 = arith.constant 0 : i32
    return %c0_i32, %c0_i32_0 : i32, i32
  }
  func.func @transform_3(%arg0: i32) -> (i32, i32) {
    %c0_i32 = arith.constant 0 : i32
    %c0_i32_0 = arith.constant 0 : i32
    %c0_i32_1 = arith.constant 0 : i32
    return %c0_i32, %c0_i32_0 : i32, i32
  }
}

</mosaic_0001>

<bundles_post_ra>
// kernel: ggnn_forward.1
= control target key start
LH: loop header
LB: loop body
LE: loop exit
PB: predicated region body
PF: predicated region fallthrough
CT: control target
= control target key end

     0   :  { %vm44_vm0 = vcmask 261120   ;;  %s2348_s0 = inlined_call_operand.vmem [shape: f32[16,32], index: 0, kind: input, shape index: {}]   ;;  %s2349_s1 = inlined_call_operand.vmem [shape: f32[16,32], index: 1, kind: input, shape index: {}]   ;;  %s2350_s2 = inlined_call_operand.vmem [shape: f32[162,128], index: 2, kind: input, shape index: {}]   ;;  %s2351_s3 = inlined_call_operand.hbm [shape: f32[16,32], index: 3, kind: output, shape index: {}]  }
   0x1   :  { %v1851_v0 = vld [vmem:[%s2350_s2 + $0x18] sm:$0xff]  ;;  %v1856_v1 = vld [vmem:[%s2350_s2 + $0x10] sm:$0xff]  ;;  %v1862_v2 = vld [vmem:[%s2348_s0] sm:$0xff] }
   0x2   :  { %1519 = vmatprep.subr.mxu0 %v1851_v0  ;;  %v1868_v3 = vld [vmem:[%s2350_s2 + $0x8] sm:$0xff]  ;;  %1527 = vmatprep.mubr.msk.f32.mxu0 %vm44_vm0, %v1862_v2 }
   0x3   :  { %1520 = vmatpush3.msra.mxu0 %v1851_v0 }
   0x4   :  { %8 = vsyncpa [#allocation3], 0  ;;  %1521 = vmatprep.subr.mxu0 %v1856_v1  ;;  %v1877_v4 = vld [vmem:[%s2350_s2] sm:$0xff]  ;;  %v1884_v5 = vld [vmem:[%s2348_s0 + $0x8] sm:$0xff]  ;;  %s1822_s24 = smov 64   ;;  %v40_v6 = vlaneseq  ;;  %vm221_vm1 = vcmask 523264  }
   0x5   :  { %1522 = vmatpush3.msra.mxu0 %v1856_v1  ;;  %215 = vrot.lane.b32.xlu1 %v1862_v2, %s1822_s24  ;;  %v1900_v9 = vld [vmem:[%s2350_s2 + $0xa0] sm:$0x3]  ;;  %v1915_v13 = vld [vmem:[%s2350_s2 + $0x78] sm:$0xff]  ;;  %v1920_v14 = vld [vmem:[%s2350_s2 + $0x70] sm:$0xff]  ;;  %vm228_vm2 = vcmask 785408   ;;  %s1823_s26 = smov 32  }
   0x6   :  { %1523 = vmatprep.subr.mxu0 %v1868_v3  ;;  %v1894_v7 = vshrl.u32 %v40_v6, 7  ;;  %v1908_v11 = vld [vmem:[%s2349_s1] sm:$0xff]  ;;  %v1930_v17 = vld [vmem:[%s2350_s2 + $0x68] sm:$0xff]  ;;  %v1948_v20 = vld [vmem:[%s2350_s2 + $0x58] sm:$0xff]  ;;  %s1824_s27 = smov 96  }
   0x7   :  { %1524 = vmatpush3.msra.mxu0 %v1868_v3  ;;  %1538 = vmatprep.mubr.msk.f32.mxu1 %vm44_vm0, %v1908_v11  ;;  %v1938_v18 = vld [vmem:[%s2350_s2 + $0x60] sm:$0xff]  ;;  %v1956_v21 = vld [vmem:[%s2350_s2 + $0x50] sm:$0xff]  ;;  %v1965_v22 = vld [vmem:[%s2350_s2 + $0x48] sm:$0xff] }
   0x8   :  { %1525 = vmatprep.subr.mxu0 %v1877_v4  ;;  %v42_v8 = vsub.s32 0, %v1894_v7  ;;  %v1974_v23 = vld [vmem:[%s2350_s2 + $0x40] sm:$0xff]  ;;  %v1983_v24 = vld [vmem:[%s2350_s2 + $0x38] sm:$0xff]  ;;  %v1992_v25 = vld [vmem:[%s2350_s2 + $0x30] sm:$0xff]  ;;  %v226_v31 = vsub.s32 1, %v1894_v7 }
   0x9   :  { %1526 = vmatpush3.msra.mxu0 %v1877_v4  ;;  %217 = vrot.lane.b32.xlu1 %v1884_v5, %s1822_s24  ;;  %v2009_v28 = vld [vmem:[%s2349_s1 + $0x8] sm:$0xff]  ;;  %v2025_v30 = vld [vmem:[%s2350_s2 + $0x20] sm:$0xff] }
   0xa   :  { %1528 = vmatmul.mubr.msk.f32.vlgmr.msra.gmra.mxu0 %vm44_vm0, %v1884_v5  ;;  %v1903_v10 = vrot.slane %v1900_v9, %v42_v8  ;;  %1541 = vmatprep.subr.mxu0 %v1915_v13  ;;  %v2016_v29 = vld [vmem:[%s2350_s2 + $0x28] sm:$0xff]  ;;  %v2034_v32 = vrot.slane %v1900_v9, %v226_v31 }
   0xb   :  { %1542 = vmatpush3.msra.mxu0 %v1915_v13 }
   0xc   :  { %1543 = vmatprep.subr.mxu0 %v1920_v14 }
   0xd   :  { %366 = vrot.lane.b32.xlu1 %v1920_v14, %s1822_s24  ;;  %1544 = vmatpush3.msra.mxu0 %v1920_v14 }
   0xe   :  { %1545 = vmatprep.subr.mxu0 %v1930_v17 }
   0xf   :  { %1546 = vmatpush3.msra.mxu0 %v1930_v17 }
  0x10   :  { %1547 = vmatprep.subr.mxu0 %v1938_v18 }
  0x11   :  { %362 = vrot.lane.b32.xlu1 %v1938_v18, %s1822_s24  ;;  %1548 = vmatpush3.msra.mxu0 %v1938_v18 }
  0x12   :  { %1549 = vmatprep.subr.mxu0 %v1948_v20 }
  0x13   :  { %1550 = vmatpush3.msra.mxu0 %v1948_v20 }
  0x14   :  { %1551 = vmatprep.subr.mxu0 %v1956_v21 }
  0x15   :  { %358 = vrot.lane.b32.xlu1 %v1956_v21, %s1822_s24  ;;  %1552 = vmatpush3.msra.mxu0 %v1956_v21 }
  0x16   :  { %1553 = vmatprep.subr.mxu0 %v1965_v22 }
  0x17   :  { %1554 = vmatpush3.msra.mxu0 %v1965_v22 }
  0x18   :  { %1555 = vmatprep.subr.mxu0 %v1974_v23 }
  0x19   :  { %354 = vrot.lane.b32.xlu1 %v1974_v23, %s1822_s24  ;;  %1556 = vmatpush3.msra.mxu0 %v1974_v23 }
  0x1a   :  { %1557 = vmatprep.subr.mxu0 %v1983_v24 }
  0x1b   :  { %1558 = vmatpush3.msra.mxu0 %v1983_v24 }
  0x1c   :  { %1559 = vmatprep.subr.mxu0 %v1992_v25 }
  0x1d   :  { %350 = vrot.lane.b32.xlu1 %v1992_v25, %s1822_s24  ;;  %1560 = vmatpush3.msra.mxu0 %v1992_v25 }
  0x1e   :  { %1561 = vmatprep.subr.mxu0 %v2016_v29 }
  0x1f   :  { %1562 = vmatpush3.msra.mxu0 %v2016_v29 }
  0x20   :  { %1563 = vmatprep.subr.mxu0 %v2025_v30 }
  0x21   :  { %1564 = vmatpush3.msra.mxu0 %v2025_v30 }
  0x22   :  { %1595 = vmatprep.subr.mxu0 %v1851_v0 }
  0x77   :  { %v216_v33 = vpop.permute.xlu1 %215 }
  0x7b   :  { %v218_v35 = vpop.permute.xlu1 %217 }
  0x7f   :  { %v2058_v40 = vpop.permute.xlu1 %366 }
  0x83   :  { %v2066_v42 = vpop.permute.xlu1 %362 }
  0x87   :  { %v2074_v44 = vpop.permute.xlu1 %358 }
  0x8b   :  { %v2082_v46 = vpop.permute.xlu1 %354 }
  0x8f   :  { %v2090_v48 = vpop.permute.xlu1 %350 }
  0xca   :  { %v1529_v12 = vpop.f32.mrf.mxu0 }
  0xcb   :  { %v123_v15 = vadd.f32 %v1529_v12, %v1903_v10 }
  0xcc   :  { %v117_v16 = vpop.f32.mrf.mxu0 }
  0xcd   :  { %130 = vrot.lane.b32.xlu0 %v123_v15, %s1822_s24  ;;  %v118_v19 = vadd.f32 %v117_v16, %v1903_v10 }
  0xd1   :  { %128 = vrot.lane.b32.xlu0 %v118_v19, %s1822_s24 }
  0xd5   :  { %368 = vrot.lane.b32.xlu0 %v1915_v13, %s1822_s24 }
  0xd9   :  { %364 = vrot.lane.b32.xlu0 %v1930_v17, %s1822_s24 }
  0xdd   :  { %360 = vrot.lane.b32.xlu0 %v1948_v20, %s1822_s24 }
  0xe1   :  { %356 = vrot.lane.b32.xlu0 %v1965_v22, %s1822_s24 }
  0xe5   :  { %352 = vrot.lane.b32.xlu0 %v1983_v24, %s1822_s24 }
  0xe9   :  { %348 = vrot.lane.b32.xlu0 %v2016_v29, %s1822_s24 }
  0xed   :  { %346 = vrot.lane.b32.xlu0 %v2025_v30, %s1822_s24 }
  0xf1   :  { %383 = vrot.lane.b32.xlu0 %v2034_v32, %s1822_s24 }
 0x13f   :  { %v131_v26 = vpop.permute.xlu0 %130 }
 0x140   :  { %1530 = vmatprep.subr.mxu1 %v131_v26 }
 0x141   :  { %1531 = vmatpush3.msra.mxu1 %v131_v26 }
 0x143   :  { %v129_v27 = vpop.permute.xlu0 %128 }
 0x144   :  { %1532 = vmatprep.subr.mxu1 %v129_v27 }
 0x145   :  { %1533 = vmatpush3.msra.mxu1 %v129_v27 }
 0x146   :  { %1534 = vmatprep.subr.mxu1 %v123_v15 }
 0x147   :  { %1535 = vmatpush3.msra.mxu1 %v123_v15  ;;  %v2056_v39 = vpop.permute.xlu0 %368 }
 0x148   :  { %1536 = vmatprep.subr.mxu1 %v118_v19 }
 0x149   :  { %1537 = vmatpush3.msra.mxu1 %v118_v19 }
 0x14a   :  { %1539 = vmatmul.mubr.msk.f32.vlgmr.msra.gmra.mxu1 %vm44_vm0, %v2009_v28  ;;  %1568 = vmatprep.subr.mxu1 %v2056_v39 }
 0x14b   :  { %1569 = vmatpush3.msra.mxu1 %v2056_v39  ;;  %v2064_v41 = vpop.permute.xlu0 %364 }
 0x14c   :  { %1570 = vmatprep.subr.mxu1 %v2058_v40 }
 0x14d   :  { %1571 = vmatpush3.msra.mxu1 %v2058_v40 }
 0x14e   :  { %1572 = vmatprep.subr.mxu1 %v2064_v41 }
 0x14f   :  { %1573 = vmatpush3.msra.mxu1 %v2064_v41  ;;  %v2072_v43 = vpop.permute.xlu0 %360 }
 0x150   :  { %1574 = vmatprep.subr.mxu1 %v2066_v42 }
 0x151   :  { %1575 = vmatpush3.msra.mxu1 %v2066_v42 }
 0x152   :  { %1576 = vmatprep.subr.mxu1 %v2072_v43 }
 0x153   :  { %1577 = vmatpush3.msra.mxu1 %v2072_v43  ;;  %v2080_v45 = vpop.permute.xlu0 %356 }
 0x154   :  { %1578 = vmatprep.subr.mxu1 %v2074_v44 }
 0x155   :  { %1579 = vmatpush3.msra.mxu1 %v2074_v44 }
 0x156   :  { %1580 = vmatprep.subr.mxu1 %v2080_v45 }
 0x157   :  { %1581 = vmatpush3.msra.mxu1 %v2080_v45  ;;  %v2088_v47 = vpop.permute.xlu0 %352 }
 0x158   :  { %1582 = vmatprep.subr.mxu1 %v2082_v46 }
 0x159   :  { %1583 = vmatpush3.msra.mxu1 %v2082_v46 }
 0x15a   :  { %1584 = vmatprep.subr.mxu1 %v2088_v47 }
 0x15b   :  { %1585 = vmatpush3.msra.mxu1 %v2088_v47  ;;  %v2096_v49 = vpop.permute.xlu0 %348 }
 0x15c   :  { %1586 = vmatprep.subr.mxu1 %v2090_v48 }
 0x15d   :  { %1587 = vmatpush3.msra.mxu1 %v2090_v48 }
 0x15e   :  { %1588 = vmatprep.subr.mxu1 %v2096_v49 }
 0x15f   :  { %1589 = vmatpush3.msra.mxu1 %v2096_v49  ;;  %v2102_v60 = vpop.permute.xlu0 %346 }
 0x160   :  { %1590 = vmatprep.subr.mxu1 %v2102_v60 }
 0x161   :  { %1591 = vmatpush3.msra.mxu1 %v2102_v60 }
 0x20a   :  { %v2038_v34 = vpop.f32.mrf.mxu1 }
 0x20b   :  { %v223_v38 = vsel %vm221_vm1, %v2038_v34, %v218_v35 }
 0x20c   :  { %v2040_v36 = vpop.f32.mrf.mxu1 }
 0x20d   :  { %v222_v37 = vsel %vm221_vm1, %v2040_v36, %v216_v33 }
 0x20e   :  { %1565 = vmatprep.mubr.msk.f32.mxu0 %vm228_vm2, %v222_v37 }
 0x20f   :  { %1566 = vmatmul.mubr.msk.f32.vlgmr.msra.gmra.mxu0 %vm228_vm2, %v223_v38 }
 0x210   :  { %1596 = vmatpush3.msra.mxu0 %v1851_v0 }
 0x211   :  { %1597 = vmatprep.subr.mxu0 %v1856_v1 }
 0x212   :  { %1598 = vmatpush3.msra.mxu0 %v1856_v1 }
 0x213   :  { %1599 = vmatprep.subr.mxu0 %v1868_v3 }
 0x214   :  { %1600 = vmatpush3.msra.mxu0 %v1868_v3 }
 0x215   :  { %1601 = vmatprep.subr.mxu0 %v1877_v4 }
 0x216   :  { %1602 = vmatpush3.msra.mxu0 %v1877_v4 }
 0x217   :  { %1617 = vmatprep.subr.mxu0 %v1915_v13 }
 0x2cf   :  { %v1567_v50 = vpop.f32.mrf.mxu0 }
 0x2d0   :  { %v307_v51 = vadd.f32 %v1567_v50, %v2034_v32 }
 0x2d1   :  { %v301_v52 = vpop.f32.mrf.mxu0 }
 0x2d2   :  { %v1368_v53 = vmul.f32 -1.442695, %v307_v51  ;;  %v302_v54 = vadd.f32 %v301_v52, %v2034_v32 }
 0x2d4   :  { %1764 = vpow2.f32 %v1368_v53  ;;  %v1367_v55 = vmul.f32 -1.442695, %v302_v54 }
 0x2d6   :  { %1766 = vpow2.f32 %v1367_v55 }
 0x2e1   :  { %v1765_v56 = vpop.eup %1764 }
 0x2e2   :  { %v317_v58 = vadd.f32 1.0, %v1765_v56 }
 0x2e3   :  { %v1767_v57 = vpop.eup %1766 }
 0x2e4   :  { %v316_v59 = vadd.f32 1.0, %v1767_v57 }
 0x2e6   :  { %1768 = vrcp.f32 %v316_v59 }
 0x2e7   :  { %1770 = vrcp.f32 %v317_v58 }
 0x2f3   :  { %v1769_v61 = vpop.eup %1768 }
 0x2f4   :  { %v322_v62 = vmul.f32 %v1769_v61, %v1862_v2  ;;  %v1771_v63 = vpop.eup %1770  ;;  %v469_v33 = vsub.f32 1.0, %v1769_v61 }
 0x2f5   :  { %v323_v6 = vmul.f32 %v1771_v63, %v1884_v5  ;;  %v470_v38 = vsub.f32 1.0, %v1771_v63 }
 0x2f6   :  { %326 = vrot.lane.b32.xlu1 %v322_v62, %s1822_s24 }
 0x2fa   :  { %328 = vrot.lane.b32.xlu1 %v323_v6, %s1822_s24 }
 0x2fe   :  { %471 = vrot.lane.b32.xlu1 %v1862_v2, %s1823_s26  ;;  %v2122_v2 = vpop.permute.xlu0 %383 }
 0x302   :  { %473 = vrot.lane.b32.xlu1 %v1884_v5, %s1823_s26 }
 0x368   :  { %v327_v7 = vpop.permute.xlu1 %326 }
 0x369   :  { %v332_v8 = vsel %vm221_vm1, %v2040_v36, %v327_v7 }
 0x36a   :  { %1592 = vmatprep.mubr.msk.f32.mxu1 %vm228_vm2, %v332_v8 }
 0x36c   :  { %v329_v9 = vpop.permute.xlu1 %328 }
 0x36d   :  { %v333_v12 = vsel %vm221_vm1, %v2038_v34, %v329_v9 }
 0x36e   :  { %1593 = vmatmul.mubr.msk.f32.vlgmr.msra.gmra.mxu1 %vm228_vm2, %v333_v12 }
 0x36f   :  { %1614 = vmatprep.mubr.msk.f32.mxu1 %vm44_vm0, %v1908_v11 }
 0x370   :  { %v472_v31 = vpop.permute.xlu1 %471 }
 0x371   :  { %v477_v35 = vmul.f32 %v472_v31, %v469_v33 }
 0x374   :  { %v474_v37 = vpop.permute.xlu1 %473 }
 0x375   :  { %v478_v52 = vmul.f32 %v474_v37, %v470_v38 }
 0x42e   :  { %v1594_v15 = vpop.f32.mrf.mxu1 }
 0x42f   :  { %v464_v19 = vadd.f32 %v1594_v15, %v2122_v2 }
 0x430   :  { %v458_v16 = vpop.f32.mrf.mxu1 }
 0x431   :  { %v459_v5 = vadd.f32 %v458_v16, %v2122_v2 }
 0x433   :  { %1772 = vtanh.f32 %v459_v5 }
 0x434   :  { %1774 = vtanh.f32 %v464_v19 }
 0x440   :  { %v1773_v26 = vpop.eup %1772 }
 0x441   :  { %481 = vrot.lane.b32.xlu0 %v1773_v26, %s1823_s26  ;;  %v1775_v27 = vpop.eup %1774 }
 0x445   :  { %483 = vrot.lane.b32.xlu0 %v1775_v27, %s1823_s26 }
 0x4b3   :  { %v482_v34 = vpop.permute.xlu0 %481 }
 0x4b4   :  { %v487_v36 = vmul.f32 %v1769_v61, %v482_v34 }
 0x4b6   :  { %v2128_v50 = vadd.f32 %v487_v36, %v477_v35 }
 0x4b7   :  { %v484_v51 = vpop.permute.xlu0 %483 }
 0x4b8   :  { %v488_v53 = vmul.f32 %v1771_v63, %v484_v51  ;;  %493 = vrot.lane.b32.xlu1 %v2128_v50, %s1824_s27 }
 0x4ba   :  { %v2132_v54 = vadd.f32 %v488_v53, %v478_v52 }
 0x4bc   :  { %495 = vrot.lane.b32.xlu0 %v2132_v54, %s1824_s27 }
 0x52a   :  { %v2136_v55 = vpop.permute.xlu1 %493 }
 0x52b   :  { %1603 = vmatprep.mubr.msk.f32.mxu0 %vm44_vm0, %v2136_v55 }
 0x52e   :  { %v2140_v56 = vpop.permute.xlu0 %495 }
 0x52f   :  { %1604 = vmatmul.mubr.msk.f32.vlgmr.msra.gmra.mxu0 %vm44_vm0, %v2140_v56 }
 0x530   :  { %1618 = vmatpush3.msra.mxu0 %v1915_v13 }
 0x531   :  { %1619 = vmatprep.subr.mxu0 %v1920_v14 }
 0x532   :  { %1620 = vmatpush3.msra.mxu0 %v1920_v14 }
 0x533   :  { %1621 = vmatprep.subr.mxu0 %v1930_v17 }
 0x534   :  { %1622 = vmatpush3.msra.mxu0 %v1930_v17 }
 0x535   :  { %1623 = vmatprep.subr.mxu0 %v1938_v18 }
 0x536   :  { %1624 = vmatpush3.msra.mxu0 %v1938_v18 }
 0x537   :  { %1625 = vmatprep.subr.mxu0 %v1948_v20 }
 0x538   :  { %1626 = vmatpush3.msra.mxu0 %v1948_v20 }
 0x539   :  { %1627 = vmatprep.subr.mxu0 %v1956_v21 }
 0x53a   :  { %1628 = vmatpush3.msra.mxu0 %v1956_v21 }
 0x53b   :  { %1629 = vmatprep.subr.mxu0 %v1965_v22 }
 0x53c   :  { %1630 = vmatpush3.msra.mxu0 %v1965_v22 }
 0x53d   :  { %1631 = vmatprep.subr.mxu0 %v1974_v23 }
 0x53e   :  { %1632 = vmatpush3.msra.mxu0 %v1974_v23 }
 0x53f   :  { %1633 = vmatprep.subr.mxu0 %v1983_v24 }
 0x540   :  { %1634 = vmatpush3.msra.mxu0 %v1983_v24 }
 0x541   :  { %1635 = vmatprep.subr.mxu0 %v1992_v25 }
 0x542   :  { %1636 = vmatpush3.msra.mxu0 %v1992_v25 }
 0x543   :  { %1637 = vmatprep.subr.mxu0 %v2016_v29 }
 0x544   :  { %1638 = vmatpush3.msra.mxu0 %v2016_v29 }
 0x545   :  { %1639 = vmatprep.subr.mxu0 %v2025_v30 }
 0x546   :  { %1640 = vmatpush3.msra.mxu0 %v2025_v30 }
 0x547   :  { %1671 = vmatprep.subr.mxu0 %v1851_v0 }
 0x5ef   :  { %v1605_v57 = vpop.f32.mrf.mxu0 }
 0x5f0   :  { %v573_v58 = vadd.f32 %v1605_v57, %v1903_v10 }
 0x5f1   :  { %v567_v59 = vpop.f32.mrf.mxu0 }
 0x5f2   :  { %v568_v61 = vadd.f32 %v567_v59, %v1903_v10  ;;  %580 = vrot.lane.b32.xlu1 %v573_v58, %s1822_s24 }
 0x5f4   :  { %578 = vrot.lane.b32.xlu0 %v568_v61, %s1822_s24 }
 0x5f6   :  { %659 = vrot.lane.b32.xlu1 %v2128_v50, %s1823_s26 }
 0x5f8   :  { %661 = vrot.lane.b32.xlu0 %v2132_v54, %s1823_s26 }
 0x664   :  { %v581_v62 = vpop.permute.xlu1 %580 }
 0x665   :  { %1606 = vmatprep.subr.mxu1 %v581_v62 }
 0x666   :  { %1607 = vmatpush3.msra.mxu1 %v581_v62  ;;  %v579_v63 = vpop.permute.xlu0 %578 }
 0x667   :  { %1608 = vmatprep.subr.mxu1 %v579_v63 }
 0x668   :  { %1609 = vmatpush3.msra.mxu1 %v579_v63  ;;  %v660_v7 = vpop.permute.xlu1 %659 }
 0x669   :  { %1610 = vmatprep.subr.mxu1 %v573_v58 }
 0x66a   :  { %1611 = vmatpush3.msra.mxu1 %v573_v58  ;;  %v662_v9 = vpop.permute.xlu0 %661 }
 0x66b   :  { %1612 = vmatprep.subr.mxu1 %v568_v61 }
 0x66c   :  { %1613 = vmatpush3.msra.mxu1 %v568_v61 }
 0x66d   :  { %1615 = vmatmul.mubr.msk.f32.vlgmr.msra.gmra.mxu1 %vm44_vm0, %v2009_v28  ;;  %1644 = vmatprep.subr.mxu1 %v2056_v39 }
 0x66e   :  { %1645 = vmatpush3.msra.mxu1 %v2056_v39 }
 0x66f   :  { %1646 = vmatprep.subr.mxu1 %v2058_v40 }
 0x670   :  { %1647 = vmatpush3.msra.mxu1 %v2058_v40 }
 0x671   :  { %1648 = vmatprep.subr.mxu1 %v2064_v41 }
 0x672   :  { %1649 = vmatpush3.msra.mxu1 %v2064_v41 }
 0x673   :  { %1650 = vmatprep.subr.mxu1 %v2066_v42 }
 0x674   :  { %1651 = vmatpush3.msra.mxu1 %v2066_v42 }
 0x675   :  { %1652 = vmatprep.subr.mxu1 %v2072_v43 }
 0x676   :  { %1653 = vmatpush3.msra.mxu1 %v2072_v43 }
 0x677   :  { %1654 = vmatprep.subr.mxu1 %v2074_v44 }
 0x678   :  { %1655 = vmatpush3.msra.mxu1 %v2074_v44 }
 0x679   :  { %1656 = vmatprep.subr.mxu1 %v2080_v45 }
 0x67a   :  { %1657 = vmatpush3.msra.mxu1 %v2080_v45 }
 0x67b   :  { %1658 = vmatprep.subr.mxu1 %v2082_v46 }
 0x67c   :  { %1659 = vmatpush3.msra.mxu1 %v2082_v46 }
 0x67d   :  { %1660 = vmatprep.subr.mxu1 %v2088_v47 }
 0x67e   :  { %1661 = vmatpush3.msra.mxu1 %v2088_v47 }
 0x67f   :  { %1662 = vmatprep.subr.mxu1 %v2090_v48 }
 0x680   :  { %1663 = vmatpush3.msra.mxu1 %v2090_v48 }
 0x681   :  { %1664 = vmatprep.subr.mxu1 %v2096_v49 }
 0x682   :  { %1665 = vmatpush3.msra.mxu1 %v2096_v49 }
 0x683   :  { %1666 = vmatprep.subr.mxu1 %v2102_v60 }
 0x684   :  { %1667 = vmatpush3.msra.mxu1 %v2102_v60 }
 0x72d   :  { %v1616_v6 = vpop.f32.mrf.mxu1 }
 0x72e   :  { %v666_v15 = vsel %vm221_vm1, %v1616_v6, %v662_v9 }
 0x72f   :  { %v650_v8 = vpop.f32.mrf.mxu1 }
 0x730   :  { %v665_v12 = vsel %vm221_vm1, %v650_v8, %v660_v7 }
 0x731   :  { %1641 = vmatprep.mubr.msk.f32.mxu0 %vm228_vm2, %v665_v12 }
 0x732   :  { %1642 = vmatmul.mubr.msk.f32.vlgmr.msra.gmra.mxu0 %vm228_vm2, %v666_v15 }
 0x733   :  { %1672 = vmatpush3.msra.mxu0 %v1851_v0 }
 0x734   :  { %1673 = vmatprep.subr.mxu0 %v1856_v1 }
 0x735   :  { %1674 = vmatpush3.msra.mxu0 %v1856_v1 }
 0x736   :  { %1675 = vmatprep.subr.mxu0 %v1868_v3 }
 0x737   :  { %1676 = vmatpush3.msra.mxu0 %v1868_v3 }
 0x738   :  { %1677 = vmatprep.subr.mxu0 %v1877_v4 }
 0x739   :  { %1678 = vmatpush3.msra.mxu0 %v1877_v4 }
 0x73a   :  { %1693 = vmatprep.subr.mxu0 %v1915_v13 }
 0x7f2   :  { %v1643_v16 = vpop.f32.mrf.mxu0 }
 0x7f3   :  { %v745_v5 = vadd.f32 %v1643_v16, %v2034_v32 }
 0x7f4   :  { %v739_v19 = vpop.f32.mrf.mxu0 }
 0x7f5   :  { %v1378_v26 = vmul.f32 -1.442695, %v745_v5  ;;  %v740_v0 = vadd.f32 %v739_v19, %v2034_v32 }
 0x7f7   :  { %1776 = vpow2.f32 %v1378_v26  ;;  %v1377_v27 = vmul.f32 -1.442695, %v740_v0 }
 0x7f9   :  { %1778 = vpow2.f32 %v1377_v27 }
 0x804   :  { %v1777_v1 = vpop.eup %1776 }
 0x805   :  { %v755_v31 = vadd.f32 1.0, %v1777_v1 }
 0x806   :  { %v1779_v33 = vpop.eup %1778 }
 0x807   :  { %1780 = vrcp.f32 %v755_v31  ;;  %v754_v3 = vadd.f32 1.0, %v1779_v33  ;;  %v38_v33 = vld [vmem:[%s2350_s2 + $0x98] sm:$0xff] }
 0x809   :  { %1782 = vrcp.f32 %v754_v3  ;;  %v37_v3 = vld [vmem:[%s2350_s2 + $0x90] sm:$0xff] }
 0x814   :  { %v1781_v34 = vpop.eup %1780 }
 0x815   :  { %v763_v4 = vmul.f32 %v1781_v34, %v2140_v56  ;;  %v858_v61 = vsub.f32 1.0, %v1781_v34 }
 0x816   :  { %v1783_v35 = vpop.eup %1782 }
 0x817   :  { %768 = vrot.lane.b32.xlu0 %v763_v4, %s1822_s24  ;;  %v762_v36 = vmul.f32 %v1783_v35, %v2136_v55  ;;  %v857_v62 = vsub.f32 1.0, %v1783_v35 }
 0x819   :  { %766 = vrot.lane.b32.xlu1 %v762_v36, %s1822_s24  ;;  %v859_v9 = vmul.f32 %v857_v62, %v2128_v50 }
 0x889   :  { %v769_v37 = vpop.permute.xlu0 %768 }
 0x88a   :  { %v773_v52 = vsel %vm221_vm1, %v1616_v6, %v769_v37  ;;  %v860_v6 = vmul.f32 %v858_v61, %v2132_v54 }
 0x88b   :  { %v767_v38 = vpop.permute.xlu1 %766 }
 0x88c   :  { %v772_v51 = vsel %vm221_vm1, %v650_v8, %v767_v38 }
 0x88d   :  { %1668 = vmatprep.mubr.msk.f32.mxu1 %vm228_vm2, %v772_v51 }
 0x88e   :  { %1669 = vmatmul.mubr.msk.f32.vlgmr.msra.gmra.mxu1 %vm228_vm2, %v773_v52 }
 0x88f   :  { %1690 = vmatprep.mubr.msk.f32.mxu1 %vm44_vm0, %v1908_v11 }
 0x94e   :  { %v1670_v53 = vpop.f32.mrf.mxu1 }
 0x94f   :  { %v852_v56 = vadd.f32 %v1670_v53, %v2122_v2 }
 0x950   :  { %v846_v57 = vpop.f32.mrf.mxu1 }
 0x951   :  { %1784 = vtanh.f32 %v852_v56  ;;  %v847_v55 = vadd.f32 %v846_v57, %v2122_v2 }
 0x953   :  { %1786 = vtanh.f32 %v847_v55 }
 0x95e   :  { %v1785_v58 = vpop.eup %1784 }
 0x95f   :  { %865 = vrot.lane.b32.xlu0 %v1785_v58, %s1823_s26 }
 0x960   :  { %v1787_v59 = vpop.eup %1786 }
 0x961   :  { %863 = vrot.lane.b32.xlu1 %v1787_v59, %s1823_s26 }
 0x9d1   :  { %v866_v63 = vpop.permute.xlu0 %865 }
 0x9d2   :  { %v870_v11 = vmul.f32 %v1781_v34, %v866_v63  ;;  %v36_v34 = vld [vmem:[%s2350_s2 + $0x88] sm:$0xff] }
 0x9d3   :  { %v864_v7 = vpop.permute.xlu1 %863 }
 0x9d4   :  { %v2231_v8 = vadd.f32 %v870_v11, %v860_v6  ;;  %v869_v12 = vmul.f32 %v1783_v35, %v864_v7  ;;  %v35_v35 = vld [vmem:[%s2350_s2 + $0x80] sm:$0xff]  ;;  %s1825_s2 = smov [#allocation2]  }
 0x9d5   :  { %s1350_s8 = sshll.u32 %s1825_s2, 4  ;;  %s1351_s8 = int_to_ptr.vmem [resolvable:$true] %s1350_s8 }
 0x9d6   :  { %v2234_v15 = vadd.f32 %v869_v12, %v859_v9  ;;  %877 = vrot.lane.b32.xlu0 %v2231_v8, %s1824_s27  ;;  %s1800_s9 = scalar_lea.vmem %s1351_s8, 256  ;;  %p1805_p1 = scmp.lt.s32.totalorder %s1351_s8, %s1351_s8 }
 0x9d7   :  { %p1801_p0 = scmp.ne.s32.totalorder %s1351_s8, %s1800_s9  ;;  %p1806_p2 = scmp.lt.s32.totalorder %s1800_s9, %s1800_s9 }
 0x9d8   :  { %875 = vrot.lane.b32.xlu1 %v2234_v15, %s1824_s27 }
 0x9d9   :  { %p1807_p3 = por %p1806_p2, %p1805_p1 }
 0x9db   :  { %p1808_p4 = pnand %p1807_p3, %p1801_p0 }
 0xa48   :  { %v2242_v5 = vpop.permute.xlu0 %877 }
 0xa4a   :  { %v2240_v16 = vpop.permute.xlu1 %875 }
 0xa4b   :  { %1679 = vmatprep.mubr.msk.f32.mxu0 %vm44_vm0, %v2240_v16 }
 0xa4c   :  { %1680 = vmatmul.mubr.msk.f32.vlgmr.msra.gmra.mxu0 %vm44_vm0, %v2242_v5 }
 0xa4d   :  { %1694 = vmatpush3.msra.mxu0 %v1915_v13 }
 0xa4e   :  { %1695 = vmatprep.subr.mxu0 %v1920_v14 }
 0xa4f   :  { %1696 = vmatpush3.msra.mxu0 %v1920_v14 }
 0xa50   :  { %1697 = vmatprep.subr.mxu0 %v1930_v17 }
 0xa51   :  { %1698 = vmatpush3.msra.mxu0 %v1930_v17 }
 0xa52   :  { %1699 = vmatprep.subr.mxu0 %v1938_v18 }
 0xa53   :  { %1700 = vmatpush3.msra.mxu0 %v1938_v18 }
 0xa54   :  { %1701 = vmatprep.subr.mxu0 %v1948_v20 }
 0xa55   :  { %1702 = vmatpush3.msra.mxu0 %v1948_v20 }
 0xa56   :  { %1703 = vmatprep.subr.mxu0 %v1956_v21 }
 0xa57   :  { %1704 = vmatpush3.msra.mxu0 %v1956_v21 }
 0xa58   :  { %1705 = vmatprep.subr.mxu0 %v1965_v22 }
 0xa59   :  { %1706 = vmatpush3.msra.mxu0 %v1965_v22 }
 0xa5a   :  { %1707 = vmatprep.subr.mxu0 %v1974_v23 }
 0xa5b   :  { %1708 = vmatpush3.msra.mxu0 %v1974_v23 }
 0xa5c   :  { %1709 = vmatprep.subr.mxu0 %v1983_v24 }
 0xa5d   :  { %1710 = vmatpush3.msra.mxu0 %v1983_v24 }
 0xa5e   :  { %1711 = vmatprep.subr.mxu0 %v1992_v25 }
 0xa5f   :  { %1712 = vmatpush3.msra.mxu0 %v1992_v25 }
 0xa60   :  { %1713 = vmatprep.subr.mxu0 %v2016_v29 }
 0xa61   :  { %1714 = vmatpush3.msra.mxu0 %v2016_v29 }
 0xa62   :  { %1715 = vmatprep.subr.mxu0 %v2025_v30 }
 0xa63   :  { %1716 = vmatpush3.msra.mxu0 %v2025_v30 }
 0xa64   :  { %1747 = vmatprep.subr.mxu0 %v38_v33 }
 0xb0c   :  { %v1681_v13 = vpop.f32.mrf.mxu0 }
 0xb0d   :  { %v955_v14 = vadd.f32 %v1681_v13, %v1903_v10 }
 0xb0e   :  { %v949_v17 = vpop.f32.mrf.mxu0 }
 0xb0f   :  { %v950_v18 = vadd.f32 %v949_v17, %v1903_v10  ;;  %962 = vrot.lane.b32.xlu1 %v955_v14, %s1822_s24 }
 0xb11   :  { %960 = vrot.lane.b32.xlu0 %v950_v18, %s1822_s24 }
 0xb13   :  { %1041 = vrot.lane.b32.xlu1 %v2234_v15, %s1823_s26 }
 0xb15   :  { %1043 = vrot.lane.b32.xlu0 %v2231_v8, %s1823_s26 }
 0xb81   :  { %v963_v20 = vpop.permute.xlu1 %962 }
 0xb82   :  { %1682 = vmatprep.subr.mxu1 %v963_v20 }
 0xb83   :  { %1683 = vmatpush3.msra.mxu1 %v963_v20  ;;  %v961_v21 = vpop.permute.xlu0 %960 }
 0xb84   :  { %1684 = vmatprep.subr.mxu1 %v961_v21 }
 0xb85   :  { %1685 = vmatpush3.msra.mxu1 %v961_v21  ;;  %v1042_v22 = vpop.permute.xlu1 %1041 }
 0xb86   :  { %1686 = vmatprep.subr.mxu1 %v955_v14 }
 0xb87   :  { %1687 = vmatpush3.msra.mxu1 %v955_v14  ;;  %v1044_v24 = vpop.permute.xlu0 %1043 }
 0xb88   :  { %1688 = vmatprep.subr.mxu1 %v950_v18 }
 0xb89   :  { %1689 = vmatpush3.msra.mxu1 %v950_v18 }
 0xb8a   :  { %1691 = vmatmul.mubr.msk.f32.vlgmr.msra.gmra.mxu1 %vm44_vm0, %v2009_v28  ;;  %1720 = vmatprep.subr.mxu1 %v2056_v39 }
 0xb8b   :  { %1721 = vmatpush3.msra.mxu1 %v2056_v39 }
 0xb8c   :  { %1722 = vmatprep.subr.mxu1 %v2058_v40 }
 0xb8d   :  { %1723 = vmatpush3.msra.mxu1 %v2058_v40 }
 0xb8e   :  { %1724 = vmatprep.subr.mxu1 %v2064_v41 }
 0xb8f   :  { %1725 = vmatpush3.msra.mxu1 %v2064_v41 }
 0xb90   :  { %1726 = vmatprep.subr.mxu1 %v2066_v42 }
 0xb91   :  { %1727 = vmatpush3.msra.mxu1 %v2066_v42 }
 0xb92   :  { %1728 = vmatprep.subr.mxu1 %v2072_v43 }
 0xb93   :  { %1729 = vmatpush3.msra.mxu1 %v2072_v43 }
 0xb94   :  { %1730 = vmatprep.subr.mxu1 %v2074_v44 }
 0xb95   :  { %1731 = vmatpush3.msra.mxu1 %v2074_v44 }
 0xb96   :  { %1732 = vmatprep.subr.mxu1 %v2080_v45 }
 0xb97   :  { %1733 = vmatpush3.msra.mxu1 %v2080_v45 }
 0xb98   :  { %1734 = vmatprep.subr.mxu1 %v2082_v46 }
 0xb99   :  { %1735 = vmatpush3.msra.mxu1 %v2082_v46 }
 0xb9a   :  { %1736 = vmatprep.subr.mxu1 %v2088_v47 }
 0xb9b   :  { %1737 = vmatpush3.msra.mxu1 %v2088_v47 }
 0xb9c   :  { %1738 = vmatprep.subr.mxu1 %v2090_v48 }
 0xb9d   :  { %1739 = vmatpush3.msra.mxu1 %v2090_v48 }
 0xb9e   :  { %1740 = vmatprep.subr.mxu1 %v2096_v49 }
 0xb9f   :  { %1741 = vmatpush3.msra.mxu1 %v2096_v49 }
 0xba0   :  { %1742 = vmatprep.subr.mxu1 %v2102_v60 }
 0xba1   :  { %1743 = vmatpush3.msra.mxu1 %v2102_v60 }
 0xc4a   :  { %v1692_v10 = vpop.f32.mrf.mxu1 }
 0xc4b   :  { %v1048_v28 = vsel %vm221_vm1, %v1692_v10, %v1044_v24 }
 0xc4c   :  { %v1032_v23 = vpop.f32.mrf.mxu1 }
 0xc4d   :  { %v1047_v25 = vsel %vm221_vm1, %v1032_v23, %v1042_v22 }
 0xc4e   :  { %1717 = vmatprep.mubr.msk.f32.mxu0 %vm228_vm2, %v1047_v25 }
 0xc4f   :  { %1718 = vmatmul.mubr.msk.f32.vlgmr.msra.gmra.mxu0 %vm228_vm2, %v1048_v28 }
 0xc50   :  { %1748 = vmatpush3.msra.mxu0 %v38_v33 }
 0xc51   :  { %1749 = vmatprep.subr.mxu0 %v37_v3 }
 0xc52   :  { %1750 = vmatpush3.msra.mxu0 %v37_v3 }
 0xc53   :  { %1751 = vmatprep.subr.mxu0 %v36_v34 }
 0xc54   :  { %1752 = vmatpush3.msra.mxu0 %v36_v34 }
 0xc55   :  { %1753 = vmatprep.subr.mxu0 %v35_v35 }
 0xc56   :  { %1754 = vmatpush3.msra.mxu0 %v35_v35 }
 0xd0f   :  { %v1719_v29 = vpop.f32.mrf.mxu0 }
 0xd10   :  { %v1127_v30 = vadd.f32 %v1719_v29, %v2034_v32 }
 0xd11   :  { %v1121_v39 = vpop.f32.mrf.mxu0 }
 0xd12   :  { %v1388_v40 = vmul.f32 -1.442695, %v1127_v30  ;;  %v1122_v41 = vadd.f32 %v1121_v39, %v2034_v32 }
 0xd14   :  { %1788 = vpow2.f32 %v1388_v40  ;;  %v1387_v42 = vmul.f32 -1.442695, %v1122_v41 }
 0xd16   :  { %1790 = vpow2.f32 %v1387_v42 }
 0xd21   :  { %v1789_v43 = vpop.eup %1788 }
 0xd22   :  { %v1137_v44 = vadd.f32 1.0, %v1789_v43 }
 0xd23   :  { %v1791_v45 = vpop.eup %1790 }
 0xd24   :  { %1792 = vrcp.f32 %v1137_v44  ;;  %v1136_v46 = vadd.f32 1.0, %v1791_v45 }
 0xd26   :  { %1794 = vrcp.f32 %v1136_v46 }
 0xd31   :  { %v1793_v47 = vpop.eup %1792 }
 0xd32   :  { %v1145_v48 = vmul.f32 %v1793_v47, %v2242_v5  ;;  %v1240_v36 = vsub.f32 1.0, %v1793_v47 }
 0xd33   :  { %v1795_v49 = vpop.eup %1794 }
 0xd34   :  { %1150 = vrot.lane.b32.xlu0 %v1145_v48, %s1822_s24  ;;  %v1144_v60 = vmul.f32 %v1795_v49, %v2240_v16  ;;  %v1239_v37 = vsub.f32 1.0, %v1795_v49  ;;  %v1242_v51 = vmul.f32 %v1240_v36, %v2231_v8 }
 0xd36   :  { %1148 = vrot.lane.b32.xlu1 %v1144_v60, %s1822_s24  ;;  %v1241_v57 = vmul.f32 %v1239_v37, %v2234_v15 }
 0xda6   :  { %v1151_v50 = vpop.permute.xlu0 %1150 }
 0xda7   :  { %v1155_v26 = vsel %vm221_vm1, %v1692_v10, %v1151_v50 }
 0xda8   :  { %v1149_v54 = vpop.permute.xlu1 %1148 }
 0xda9   :  { %v1154_v19 = vsel %vm221_vm1, %v1032_v23, %v1149_v54 }
 0xdaa   :  { %1744 = vmatprep.mubr.msk.f32.mxu1 %vm228_vm2, %v1154_v19 }
 0xdab   :  { %1745 = vmatmul.mubr.msk.f32.vlgmr.msra.gmra.mxu1 %vm228_vm2, %v1155_v26 }
 0xe6b   :  { %v1746_v0 = vpop.f32.mrf.mxu1 }
 0xe6c   :  { %v1234_v27 = vadd.f32 %v1746_v0, %v2122_v2 }
 0xe6d   :  { %v1228_v1 = vpop.f32.mrf.mxu1 }
 0xe6e   :  { %1796 = vtanh.f32 %v1234_v27  ;;  %v1229_v31 = vadd.f32 %v1228_v1, %v2122_v2 }
 0xe70   :  { %1798 = vtanh.f32 %v1229_v31 }
 0xe7b   :  { %v1797_v4 = vpop.eup %1796 }
 0xe7c   :  { %1247 = vrot.lane.b32.xlu0 %v1797_v4, %s1823_s26 }
 0xe7d   :  { %v1799_v2 = vpop.eup %1798 }
 0xe7e   :  { %1245 = vrot.lane.b32.xlu1 %v1799_v2, %s1823_s26 }
 0xeee   :  { %v1248_v38 = vpop.permute.xlu0 %1247 }
 0xeef   :  { %v1252_v52 = vmul.f32 %v1793_v47, %v1248_v38 }
 0xef0   :  { %v1246_v53 = vpop.permute.xlu1 %1245 }
 0xef1   :  { %v1254_v56 = vadd.f32 %v1252_v52, %v1242_v51  ;;  %v1251_v55 = vmul.f32 %v1795_v49, %v1246_v53 }
 0xef3   :  { %v1253_v58 = vadd.f32 %v1251_v55, %v1241_v57  ;;  %1259 = vrot.lane.b32.xlu0 %v1254_v56, %s1824_s27 }
 0xef5   :  { %1257 = vrot.lane.b32.xlu1 %v1253_v58, %s1824_s27 }
 0xef9   :  { %1261 = vrot.lane.b32.xlu1 %v2034_v32, %s1823_s26 }
 0xf65   :  { %v1260_v61 = vpop.permute.xlu0 %1259 }
 0xf67   :  { %v1258_v59 = vpop.permute.xlu1 %1257 }
 0xf68   :  { %1755 = vmatprep.mubr.msk.f32.mxu0 %vm44_vm0, %v1258_v59 }
 0xf69   :  { %1756 = vmatmul.mubr.msk.f32.vlgmr.msra.gmra.mxu0 %vm44_vm0, %v1260_v61 }
 0xf6b   :  { %v1262_v62 = vpop.permute.xlu1 %1261 }
0x1029   :  { %v1757_v63 = vpop.f32.mrf.mxu0 }
0x102a   :  { %v1340_v6 = vadd.f32 %v1757_v63, %v1262_v62 }
0x102b   :  { %v1334_v11 = vpop.f32.mrf.mxu0 }
0x102c   :  { %1344 = vst.msk [vmem:[#allocation2 + $0x8] sm:$0xff] %vm44_vm0, %v1340_v6  ;;  %v1335_v7 = vadd.f32 %v1334_v11, %v1262_v62 }
0x102e   :  { %1343 = vst.msk [vmem:[#allocation2] sm:$0xff] %vm44_vm0, %v1335_v7 }
0x102f   :  { %1811 = shalt.err (!%p1808_p4)
}
0x1030   :  { %s1826_s10 = smov 128   ;;  %s1827_s11 = smov 8  }
0x1031   :  { %1356 = dma.vmem_to_hbm [thread:$0]  %s1351_s8, 256, %s2351_s3, [#allocation3], %s1826_s10, %s1826_s10, %s1827_s11  }
0x1032   :  { %1820 = dma.done.wait [#allocation3], 256  }
0x1033   :  { %1821 = vsyncadd [#allocation3], 4294967040 }
0x1034   :  { %1360 = vsyncpa [#allocation3], 1 }

</bundles_post_ra>
